<compile_context>
chip_gen: v6e
topology: v6e:2x2x1
jax: 0.10.0
libtpu: 0.0.40
codegen_flags: <defaults>
</compile_context>

<pallas_src>
import functools

import jax
import jax.numpy as jnp
from jax.experimental import pallas as pl
from jax.experimental.pallas import tpu as pltpu

_LANE = 128
_SUBLANE = 8


def _round_up(x, m):
    return (x + m - 1) // m * m


def _choose_tile_m(n_pad, tile_m, batch):
    """Largest sublane-aligned divisor of n_pad (<= tile_m), preferring an even
    grid-step count (and >= 4 steps) so both v7x TensorCores stay busy."""
    tile_m = max(tile_m, _SUBLANE)
    cands = [d for d in range(_SUBLANE, min(tile_m, n_pad) + 1, _SUBLANE)
             if n_pad % d == 0]
    if not cands:                       # n_pad is always a multiple of 8, so
        return _SUBLANE                 # this is just a safety net.
    steps = lambda d: (batch * n_pad) // d
    for d in sorted(cands, reverse=True):
        if steps(d) % 2 == 0 and steps(d) >= 4:
            return d
    for d in sorted(cands, reverse=True):
        if steps(d) % 2 == 0:
            return d
    return max(cands)


def _patch_embed_kernel(patches_ref, w_ref, pos_ref, out_ref, *,
                        tm, tiles_per_batch):
    # patches_ref : (TM, K_pad)     compute dtype (bf16 default), streamed
    # w_ref       : (K_pad, N_pad)  compute dtype, constant block (DMA'd once)
    # pos_ref     : (n_pad, N_pad)  f32, conv bias folded in, constant block
    # out_ref     : (TM, N_pad)     output dtype (bf16 default), streamed
    y = jnp.dot(patches_ref[...], w_ref[...], preferred_element_type=jnp.float32)
    if tiles_per_batch == 1:
        pos = pos_ref[...]
    else:
        t = pl.program_id(0) % tiles_per_batch
        row0 = pl.multiple_of(t * tm, _SUBLANE)
        pos = pos_ref[pl.ds(row0, tm), :]
    out_ref[...] = (y + pos).astype(out_ref.dtype)      # f32 epilogue, then cast


def embeddings_forward(x, conv_w, conv_b, pos_emb, patch_size, *,
                       tile_m=512,
                       compute_dtype=jnp.bfloat16,
                       out_dtype=jnp.bfloat16,
                       keep_padded=True,
                       patches_buffers=2):
    """Patchify-projection embeddings.

    x        : (B, C, H, W) NCHW
    conv_w   : (hidden, C, p, p)   Conv2d(C -> hidden, kernel=p, stride=p), OIHW
    conv_b   : (hidden,)
    pos_emb  : (1, n_patches, hidden)

    Returns (embeddings, None).  By default `embeddings` is the padded,
    lane-dense (B, n_pad, N_pad) bf16 array (rows >= n_patches, cols >= hidden)
    so the consumer keeps 128-multiple last dims and no extra crop pass is
    materialized; pass keep_padded=False to get (B, n_patches, hidden).

    tile_m: 512 is fine on all generations (blocks are only a few MB); it is
    automatically reduced to a sublane-aligned divisor of the per-batch row
    count so there is no per-batch padding waste and the grid-step count stays
    even for v7x megacore.
    """
    B, C, H, W = x.shape
    p = patch_size
    Hp, Wp = H // p, W // p
    n_patches = Hp * Wp
    hidden = conv_w.shape[0]
    K = C * p * p

    # --- lane/sublane-dense padding ---
    K_pad = _round_up(K, _LANE)            # lane-dense contraction, full MXU depth
    N_pad = _round_up(hidden, _LANE)       # lane-dense output -> unmasked vst
    n_pad = _round_up(n_patches, _SUBLANE) # per-batch rows padded only to sublane
    TM = _choose_tile_m(n_pad, tile_m, B)
    tiles_per_batch = n_pad // TM
    M_total = B * n_pad

    # --- glue: im2col in (c, ph, pw) order matching the flattened OIHW weight.
    # Cast to the compute dtype *first* so the transpose pass moves half the
    # bytes when bf16.  (Full in-kernel fusion: see TODO above.) ---
    xp = x.astype(compute_dtype)
    patches = xp.reshape(B, C, Hp, p, Wp, p)
    patches = patches.transpose(0, 2, 4, 1, 3, 5).reshape(B, n_patches, K)
    patches = jnp.pad(patches, ((0, 0), (0, n_pad - n_patches), (0, K_pad - K)))
    patches = patches.reshape(M_total, K_pad)

    # conv weight (hidden, C, p, p) -> (K, hidden), same (c, ph, pw) order.
    w_mat = conv_w.reshape(hidden, K).T
    w_mat = jnp.pad(w_mat, ((0, K_pad - K), (0, N_pad - hidden))).astype(compute_dtype)

    # Fold the conv bias into the position embedding once (kept in f32).
    pos_bias = (pos_emb.reshape(n_patches, hidden).astype(jnp.float32)
                + conv_b.astype(jnp.float32))
    pos_bias = jnp.pad(pos_bias, ((0, n_pad - n_patches), (0, N_pad - hidden)))

    grid = (M_total // TM,)

    # VMEM budget: 2x the streaming tiles (patches in, out) + 1x the resident
    # constant blocks (weight, pos table) + fixed headroom for compiler scratch.
    cd = jnp.dtype(compute_dtype).itemsize
    od = jnp.dtype(out_dtype).itemsize
    streaming = TM * K_pad * cd + TM * N_pad * od
    resident = K_pad * N_pad * cd + n_pad * N_pad * 4
    vmem_limit = 2 * streaming + resident + (8 << 20)
    vmem_limit = min(max(vmem_limit, 16 << 20), 64 << 20)   # v7x-safe ceiling

    # Optional deeper buffering on the patches stream (v5e, only if profiling
    # shows exposed DMA at step boundaries).
    patches_spec_kwargs = {}
    if patches_buffers is not None and patches_buffers > 2:
        patches_spec_kwargs["pipeline_mode"] = pl.Buffered(patches_buffers)
    patches_spec = pl.BlockSpec((TM, K_pad), lambda m: (m, 0),
                                **patches_spec_kwargs)

    kernel = functools.partial(_patch_embed_kernel,
                               tm=TM, tiles_per_batch=tiles_per_batch)

    out = pl.pallas_call(
        kernel,
        out_shape=jax.ShapeDtypeStruct((M_total, N_pad), out_dtype),
        grid_spec=pltpu.PrefetchScalarGridSpec(
            num_scalar_prefetch=0,
            grid=grid,
            in_specs=[
                patches_spec,
                # Constant block indices -> weight and pos table are each DMA'd
                # once and stay VMEM-resident for the whole grid.
                pl.BlockSpec((K_pad, N_pad), lambda m: (0, 0)),
                pl.BlockSpec((n_pad, N_pad), lambda m: (0, 0)),
            ],
            out_specs=pl.BlockSpec((TM, N_pad), lambda m: (m, 0)),
        ),
        compiler_params=pltpu.CompilerParams(
            dimension_semantics=("parallel",),
            vmem_limit_bytes=vmem_limit),
    )(patches, w_mat, pos_bias)

    emb = out.reshape(B, n_pad, N_pad)
    if not keep_padded:
        emb = emb[:, :n_patches, :hidden]
    # dropout: identity in eval / inference mode.
    return emb, None


if __name__ == "__main__":
    # Small shapes consistent with the module (non-hybrid config):
    #   img_size=16, patch size=4 -> n_patches = (16//4)*(16//4) = 16
    B, C, H, W = 2, 3, 16, 16
    patch = 4
    hidden = 32
    n_patches = (H // patch) * (W // patch)

    key = jax.random.PRNGKey(0)
    k_x, k_w, k_b, k_pos = jax.random.split(key, 4)

    x = jax.random.normal(k_x, (B, C, H, W), dtype=jnp.float32)
    conv_w = jax.random.normal(k_w, (hidden, C, patch, patch), dtype=jnp.float32) * 0.05
    conv_b = jax.random.normal(k_b, (hidden,), dtype=jnp.float32) * 0.05
    pos_emb = jax.random.normal(k_pos, (1, n_patches, hidden), dtype=jnp.float32) * 0.02

    # Reference with plain-JAX conv (lax) to validate semantics.
    ref = jax.lax.conv_general_dilated(
        x, conv_w, window_strides=(patch, patch), padding="VALID",
        dimension_numbers=("NCHW", "OIHW", "NCHW"))
    ref = ref + conv_b.reshape(1, hidden, 1, 1)
    ref = ref.reshape(B, hidden, n_patches).transpose(0, 2, 1) + pos_emb

    # Default fast path: bf16 operands, bf16 output, padded lane-dense layout.
    fwd = jax.jit(functools.partial(embeddings_forward, patch_size=patch))
    emb, feats = fwd(x, conv_w, conv_b, pos_emb)
    emb = jax.block_until_ready(emb)
    assert feats is None
    assert emb.dtype == jnp.bfloat16
    assert emb.shape[0] == B and emb.shape[1] % 8 == 0 and emb.shape[2] % 128 == 0
    cropped = emb[:, :n_patches, :hidden].astype(jnp.float32)   # consumer-side crop
    assert jnp.allclose(cropped, ref, atol=5e-2, rtol=5e-2)

    # Reference-precision path (f32 operands/output, cropped) validates semantics.
    fwd32 = jax.jit(functools.partial(
        embeddings_forward, patch_size=patch,
        compute_dtype=jnp.float32, out_dtype=jnp.float32, keep_padded=False))
    emb32, _ = fwd32(x, conv_w, conv_b, pos_emb)
    emb32 = jax.block_until_ready(emb32)
    assert emb32.shape == (B, n_patches, hidden)
    assert jnp.allclose(emb32, ref, atol=1e-4, rtol=1e-4)

    print("KERNEL_OK")
</pallas_src>

<mosaic_0001>
module attributes {stable_mosaic.version = 11 : i64} {
  func.func @_patch_embed_kernel(%arg0: i32, %arg1: memref<8x128xbf16, #tpu.memory_space<vmem>>, %arg2: memref<128x128xbf16, #tpu.memory_space<vmem>>, %arg3: memref<16x128xf32, #tpu.memory_space<vmem>>, %arg4: memref<8x128xbf16, #tpu.memory_space<vmem>>) attributes {dimension_semantics = [#tpu.dimension_semantics<parallel>], iteration_bounds = array<i64: 4>, scalar_prefetch = 0 : i64, scratch_operands = 0 : i64, tpu.core_type = #tpu.core_type<tc>, window_params = [{transform_indices = @transform_0, window_bounds = array<i64: 8, 128>}, {pipeline_mode = #tpu.pipeline_mode<synchronous>, transform_indices = @transform_1, window_bounds = array<i64: 128, 128>}, {pipeline_mode = #tpu.pipeline_mode<synchronous>, transform_indices = @transform_2, window_bounds = array<i64: 16, 128>}, {transform_indices = @transform_3, window_bounds = array<i64: 8, 128>}]} {
    %c0 = arith.constant 0 : index
    %c0_0 = arith.constant 0 : index
    %0 = vector.load %arg1[%c0, %c0_0] : memref<8x128xbf16, #tpu.memory_space<vmem>>, vector<8x128xbf16>
    %c0_1 = arith.constant 0 : index
    %c0_2 = arith.constant 0 : index
    %1 = vector.load %arg2[%c0_1, %c0_2] : memref<128x128xbf16, #tpu.memory_space<vmem>>, vector<128x128xbf16>
    %cst = arith.constant dense<0.000000e+00> : vector<8x128xf32>
    %2 = tpu.matmul %0, %1, %cst {dimension_numbers = #tpu.dot_dimension_numbers<[1], [0], [0], [1], [0, 0, 1, 1], [], []>} : vector<8x128xbf16>, vector<128x128xbf16>, vector<8x128xf32> -> vector<8x128xf32>
    %c2_i32 = arith.constant 2 : i32
    %c0_i32 = arith.constant 0 : i32
    %3 = arith.cmpi eq, %c2_i32, %c0_i32 : i32
    %c1_i32 = arith.constant 1 : i32
    %4 = arith.select %3, %c1_i32, %c2_i32 : i32
    %5 = arith.remsi %arg0, %4 : i32
    %c0_i32_3 = arith.constant 0 : i32
    %6 = arith.cmpi ne, %5, %c0_i32_3 : i32
    %c0_i32_4 = arith.constant 0 : i32
    %7 = arith.cmpi slt, %5, %c0_i32_4 : i32
    %c0_i32_5 = arith.constant 0 : i32
    %8 = arith.cmpi slt, %4, %c0_i32_5 : i32
    %9 = arith.xori %7, %8 : i1
    %10 = arith.andi %9, %6 : i1
    %11 = arith.addi %5, %4 : i32
    %12 = arith.select %10, %11, %5 : i32
    %c8_i32 = arith.constant 8 : i32
    %13 = arith.muli %12, %c8_i32 : i32
    %14 = tpu.assume_multiple %13, 8 : i32
    %15 = arith.index_cast %14 : i32 to index
    %c0_6 = arith.constant 0 : index
    %16 = vector.load %arg3[%15, %c0_6] : memref<16x128xf32, #tpu.memory_space<vmem>>, vector<8x128xf32>
    %17 = arith.addf %2, %16 : vector<8x128xf32>
    %18 = arith.truncf %17 : vector<8x128xf32> to vector<8x128xbf16>
    %c0_7 = arith.constant 0 : index
    %c0_8 = arith.constant 0 : index
    %19 = vector.load %arg4[%c0_7, %c0_8] : memref<8x128xbf16, #tpu.memory_space<vmem>>, vector<8x128xbf16>
    tpu.vector_store %arg4[%c0_7, %c0_8], %18 {strides = array<i32>} : memref<8x128xbf16, #tpu.memory_space<vmem>>, vector<8x128xbf16>,
    return
  }
  func.func @transform_0(%arg0: i32) -> (i32, i32) {
    %c0_i32 = arith.constant 0 : i32
    %c0_i32_0 = arith.constant 0 : i32
    return %arg0, %c0_i32 : i32, i32
  }
  func.func @transform_1(%arg0: i32) -> (i32, i32) {
    %c0_i32 = arith.constant 0 : i32
    %c0_i32_0 = arith.constant 0 : i32
    %c0_i32_1 = arith.constant 0 : i32
    return %c0_i32, %c0_i32_0 : i32, i32
  }
  func.func @transform_2(%arg0: i32) -> (i32, i32) {
    %c0_i32 = arith.constant 0 : i32
    %c0_i32_0 = arith.constant 0 : i32
    %c0_i32_1 = arith.constant 0 : i32
    return %c0_i32, %c0_i32_0 : i32, i32
  }
  func.func @transform_3(%arg0: i32) -> (i32, i32) {
    %c0_i32 = arith.constant 0 : i32
    %c0_i32_0 = arith.constant 0 : i32
    return %arg0, %c0_i32 : i32, i32
  }
}

</mosaic_0001>

<bundles_post_ra>
// kernel: embeddings_forward.1
= control target key start
LH: loop header
LB: loop body
LE: loop exit
PB: predicated region body
PF: predicated region fallthrough
CT: control target
= control target key end

     0   :  { %8 = vsyncpa [#allocation3], 0  ;;  %s678_s0 = inlined_call_operand.vmem [shape: bf16[32,128], index: 0, kind: input, shape index: {}]   ;;  %s679_s1 = inlined_call_operand.vmem [shape: bf16[128,128], index: 1, kind: input, shape index: {}]   ;;  %s680_s2 = inlined_call_operand.vmem [shape: f32[16,128], index: 2, kind: input, shape index: {}]   ;;  %s681_s3 = inlined_call_operand.hbm [shape: bf16[32,128], index: 3, kind: output, shape index: {}]  }
   0x1   :  { %10 = vsyncpa [#allocation3 + $0x1], 0  ;;  %s549_s12 = smov 0   ;;  %s551_s13 = smov 0  }
   0x2   :  { %s553_s14 = smov 0   ;;  %s555_s15 = smov 0  }
   0x3 LB: > { %s570_s16 = sadd.s32 4294967295, %s524_s15   ;;  %s364_s17 = sadd.s32 4294967294, %s524_s15   ;;  %s524_s15 = sphi %s555_s15, %s687_s15   ;;  %s520_s14 = sphi %s553_s14, %s686_s14   ;;  %s516_s13 = sphi %s551_s13, %s685_s13   ;;  %s512_s12 = sphi %s549_s12, %s684_s12  }
   0x4   : > { %s574_s18 = sadd.s32 1, %s524_s15   ;;  %s91_s19 = sadd.s32 1, %s520_s14 }
   0x5   : > { %s88_s20 = ssub.s32 %s524_s15, %s574_s18  ;;  %p101_p0 = scmp.ne.s32.totalorder %s520_s14, %s516_s13 }
   0x6   : > { %p89_p1 = scmp.eq.s32.totalorder %s88_s20, 0  ;;  %p102_p2 = scmp.eq.s32.totalorder %s570_s16, 3 }
   0x7   : > { %p107_p3 = scmp.ne.s32.totalorder %s516_s13, %s512_s12  ;;  %p108_p4 = scmp.eq.s32.totalorder %s364_s17, 3 }
   0x8   : > { %s585_s21 = scalar_select %p89_p1, %s520_s14, %s91_s19  }
   0x9   : > { %p587_p5 = por %p102_p2, %p101_p0  ;;  %p591_p6 = por %p108_p4, %p107_p3 }
   0xa   : > { %p367_p7 = scmp.ge.s32.totalorder %s524_s15, 1  ;;  %p139_p8 = scmp.lt.s32.totalorder %s524_s15, 5 }
   0xc   : > { %p140_p9 = pnand %p367_p7, %p139_p8 }
   0xd   : > { %p162_p10 = scmp.lt.s32.totalorder (!%p140_p9), %s570_s16, 3  ;;  %s185_s27 = ssub.s32 (!%p140_p9), 0, %s570_s16 }
   0xe   : > { %143 = sbr.rel (%p140_p9) target bundleno = 263 (0x107), region = 32  ;;  %s370_s28 = smin.u32 (!%p140_p9), %s570_s16, %s185_s27 }
   0xf   : > { %s187_s29 = sand.u32 (!%p140_p9), 1, %s370_s28   ;;  %p184_p11 = scmp.lt.s32.totalorder (!%p140_p9), %s570_s16, 0 }
  0x10   : > { %s188_s30 = ssub.s32 (!%p140_p9), 0, %s187_s29  ;;  %s159_s5 = sand.u32 (!%p140_p9), 1, %s516_s13  }
  0x11   : > { %s368_s7 = sshll.u32 (!%p140_p9), %s159_s5, 2  ;;  %s383_s11 = sshll.u32 (!%p140_p9), %s570_s16, 6 }
  0x12   : > { %s637_s25 = scalar_lea.hbm (!%p140_p9), %s681_s3, %s383_s11  ;;  %s528_s27 = smov (!%p140_p9), [#allocation2]  }
  0x13   : > { %v456_v0 = vld [vmem:[%s679_s1 + $0x38] sm:$0xff]   ;;  %v526_v1 = vmov 0.0   ;;  %v457_v2 = vld [vmem:[%s679_s1 + $0x30] sm:$0xff]   ;;  %vm527_vm0 = vmmov 0   ;;  %v458_v3 = vld [vmem:[%s679_s1 + $0x28] sm:$0xff]   ;;  %s163_s9 = scalar_select %p162_p10, %s570_s16, 3 }
  0x14   : > { %395 = vmatprep.subr.bf16.mxu0 %v526_v1  ;;  %411 = vmatprep.mubr.msk.bf16.mxu0 %vm527_vm0, %v526_v1  ;;  %v459_v4 = vld [vmem:[%s679_s1 + $0x20] sm:$0xff]   ;;  %v460_v5 = vld [vmem:[%s679_s1 + $0x18] sm:$0xff]   ;;  %v461_v6 = vld [vmem:[%s679_s1 + $0x10] sm:$0xff]   ;;  %s689_s30 = smov (!%p184_p11, %s188_s30), %s187_s29  ;;  %s468_s28 = sshll.u32 %s528_s27, 4  ;;  %s469_s28 = int_to_ptr.vmem [resolvable:$false] %s468_s28 }
  0x15   : > { %396 = vmatpush3.bf16.msra.mxu0 %v456_v0  ;;  %v462_v7 = vld [vmem:[%s679_s1 + $0x8] sm:$0xff]   ;;  %s369_s17 = sshll.u32 %s163_s9, 2  ;;  %v463_v8 = vld [vmem:[%s679_s1] sm:$0xff]   ;;  %p372_p12 = scmp.lt.s32.totalorder %s689_s30, 0 }
  0x16   : > { %397 = vmatprep.subr.bf16.mxu0 %v526_v1  ;;  %s165_s26 = scalar_lea.vmem %s678_s0, %s369_s17  ;;  %s194_s4 = sadd.s32 2, %s689_s30 }
  0x17   : > { %v167_v9 = vld [vmem:[%s165_s26] sm:$0xf]  ;;  %s691_s4 = smov (!%p372_p12, %s194_s4), %s689_s30  ;;  %s161_s17 = scalar_lea.vmem [#allocation2], %s368_s7 }
  0x18   : > { %s373_s6 = sshll.u32 %s691_s4, 3  ;;  %s303_s19 = sshll.u32 %s161_s17, 4  ;;  %s639_s19 = int_to_ptr.vmem [resolvable:$true] %s303_s19 }
  0x19   : > { %398 = vmatpush3.bf16.msra.mxu0 %v457_v2  ;;  %s197_s10 = scalar_lea.vmem %s680_s2, %s373_s6  ;;  %s290_s26 = scalar_lea.sflag [#allocation3], %s159_s5 }
  0x1a   : > { %399 = vmatprep.subr.bf16.mxu0 %v526_v1  ;;  %v198_v10 = vld [vmem:[%s197_s10] sm:$0xff]  ;;  %s464_s16 = scalar_lea.vmem %s639_s19, 64  ;;  %s470_s29 = scalar_lea.vmem %s469_s28, 128 }
  0x1b   : > { %p465_p13 = scmp.ne.s32.totalorder %s639_s19, %s464_s16  ;;  %p471_p2 = scmp.lt.s32.totalorder %s639_s19, %s469_s28 }
  0x1c   : > { %p472_p3 = scmp.lt.s32.totalorder %s470_s29, %s464_s16 }
  0x1d   : > { %400 = vmatpush3.bf16.msra.mxu0 %v458_v3  ;;  %p466_p0 = pnand %p465_p13, %p587_p5 }
  0x1e   : > { %401 = vmatprep.subr.bf16.mxu0 %v526_v1  ;;  %p473_p4 = por %p472_p3, %p471_p2 }
  0x1f   : > { %p467_p1 = pneg %p466_p0 }
  0x21   : > { %402 = vmatpush3.bf16.msra.mxu0 %v459_v4  ;;  %p474_p7 = pnand %p473_p4, %p467_p1 }
  0x22   : > { %403 = vmatprep.subr.bf16.mxu0 %v526_v1 }
  0x25   : > { %404 = vmatpush3.bf16.msra.mxu0 %v460_v5 }
  0x26   : > { %405 = vmatprep.subr.bf16.mxu0 %v526_v1 }
  0x29   : > { %406 = vmatpush3.bf16.msra.mxu0 %v461_v6 }
  0x2a   : > { %407 = vmatprep.subr.bf16.mxu0 %v526_v1 }
  0x2d   : > { %408 = vmatpush3.bf16.msra.mxu0 %v462_v7 }
  0x2e   : > { %409 = vmatprep.subr.bf16.mxu0 %v526_v1 }
  0x31   : > { %410 = vmatpush3.bf16.msra.mxu0 %v463_v8 }
  0x34   : > { %412 = vmatmul.mubr.bf16.vlgmr.msra.gmra.mxu0 %v167_v9 }
  0xf4   : > { %v281_v11 = vpop.f32.mrf.mxu0 }
  0xf5   : > { %v282_v12 = vadd.f32 %v281_v11, %v198_v10 }
  0xf6   : > { %v413_v13 = vpop.f32.mrf.mxu0 }
  0xf7   : > { %v287_v14 = vpack.c.bf16 %v282_v12, %v282_v12 }
  0xf8   : > { %v284_v15 = vpop.f32.mrf.mxu0 }
  0xf9   : > { %288 = vst [vmem:[%s161_s17] sm:$0xf] %v287_v14 }
  0xfa   : > { %v414_v16 = vpop.f32.mrf.mxu0 }
  0xfb   : > { %477 = shalt.err (!%p474_p7)
}
  0xfc   : > { %s478_s30 = scalar_lea.hbm %s637_s25, 64  ;;  %s482_s6 = scalar_lea.hbm %s681_s3, 256 }
  0xfd   : > { %p479_p8 = scmp.ne.s32.totalorder %s637_s25, %s478_s30  ;;  %p483_p11 = scmp.lt.s32.totalorder %s637_s25, %s681_s3 }
  0xfe   : > { %p484_p12 = scmp.lt.s32.totalorder %s482_s6, %s478_s30 }
  0xff   : > { %p480_p9 = pnand %p479_p8, %p587_p5 }
 0x100   : > { %p485_p13 = por %p484_p12, %p483_p11 }
 0x101   : > { %p481_p10 = pneg %p480_p9 }
 0x103   : > { %p486_p0 = pnand %p485_p13, %p481_p10 }
 0x105   : > { %489 = shalt.err (!%p486_p0)
}
 0x106   : > { %415 = dma.vmem_to_hbm [thread:$0]  (%p587_p5), %s639_s19, 64, %s637_s25, %s290_s26  }
 0x107 PF: > { %p421_p1 = scmp.ge.s32.totalorder %s524_s15, 2  ;;  %s315_s9 = sand.u32 1, %s512_s12  }
 0x108   : > { %s316_s10 = scalar_lea.sflag [#allocation3], %s315_s9 }
 0x109   : > { %p418_p2 = pnand %p421_p1, %p591_p6 }
 0x10b   : > { %p419_p3 = pneg %p418_p2 }
 0x10d   : > { %507 = dma.done.wait (%p419_p3), %s316_s10, 64  }
 0x10e   : > { %509 = vsyncadd (%p419_p3), %s316_s10, 4294967232  ;;  %p13_p4 = scmp.ge.s32.totalorder %s574_s18, 6   ;;  %s684_s12 = smov %s516_s13 }
 0x10f   : > { %s685_s13 = smov %s520_s14  ;;  %s686_s14 = smov %s585_s21 }
 0x110   : > { %s687_s15 = smov %s574_s18  ;;  %15 = sbr.rel (!%p13_p4) target bundleno = 3 (0x3), region = 68 }
 0x115   :  { %321 = vsyncpa [#allocation3], 1 }
 0x116   :  { %323 = vsyncpa [#allocation3 + $0x1], 1 }

</bundles_post_ra>
